<compile_context>
chip_gen: v5e
topology: v5e:2x2
jax: 0.10.0
libtpu: 0.0.40
codegen_flags: <defaults>
</compile_context>

<pallas_src>
import jax
import jax.numpy as jnp
from jax.experimental import pallas as pl
from jax.experimental.pallas import tpu as pltpu

K_IN = 300   # input feature dim (matches torch.randn(300, 4))
N_OUT = 4    # output feature dim

MAX_TM = 4096        # batch-tile rows; ~16.3 MiB padded+double-buffered VMEM
SMALL_B_XLA = 2048   # below this, plain XLA dot beats pallas_call dispatch
VMEM_LIMIT_BYTES = 40 << 20  # explicit scoped-VMEM limit; safe on v5e/v6e/v7x


def _round_up(n, m):
    return ((n + m - 1) // m) * m


def matmul_kernel(x_ref, w_ref, o_ref):
    # x tile (tm, K) @ weights (K, N); f32 accumulation on the MXU.
    o_ref[...] = jnp.dot(
        x_ref[...], w_ref[...], preferred_element_type=jnp.float32
    ).astype(o_ref.dtype)


def _pick_tile(B):
    """Batch-tile rows: multiple of 8 (or == B), >=2 grid steps when worthwhile."""
    if B <= 16:
        # Tiny forced-pallas path: one block equal to the full array dims.
        return B
    if B <= 2 * MAX_TM:
        # At least 2 grid steps so v7x's two TensorCores both get work.
        return min(MAX_TM, min(B, _round_up(pl.cdiv(B, 2), 8)))
    return MAX_TM


def single_nn_forward(x, weights, *, force_pallas=False):
    """x: (B, 300) float32, weights: (300, 4) float32 -> (B, 4) float32."""
    B, K = x.shape
    K2, N = weights.shape
    assert K == K2, f"feature-dim mismatch: {K} vs {K2}"

    # Tiny-batch fast path: pallas_call dispatch overhead dominates here.
    if B <= SMALL_B_XLA and not force_pallas:
        return jnp.dot(x, weights, preferred_element_type=jnp.float32)

    tm = _pick_tile(B)
    grid = (pl.cdiv(B, tm),)

    cost = pl.CostEstimate(
        flops=2 * B * K * N,
        transcendentals=0,
        bytes_accessed=B * K * 4 + K * N * 4 + B * N * 4,
    )

    return pl.pallas_call(
        matmul_kernel,
        out_shape=jax.ShapeDtypeStruct((B, N), jnp.float32),
        grid_spec=pltpu.PrefetchScalarGridSpec(
            num_scalar_prefetch=0,
            grid=grid,
            in_specs=[
                # x: one (tm, K) row-block per grid step -> pipelined HBM reads.
                pl.BlockSpec((tm, K), lambda i: (i, 0)),
                # weights: same block every step -> stays resident in VMEM.
                pl.BlockSpec((K, N), lambda i: (0, 0)),
            ],
            out_specs=pl.BlockSpec((tm, N), lambda i: (i, 0)),
        ),
        compiler_params=pltpu.CompilerParams(
            # Independent batch tiles: lets v7x shard across its 2 TensorCores.
            dimension_semantics=("parallel",),
            # Real padded footprint ~16.3 MiB; explicit limit avoids tripping
            # the 16 MiB (v5e) / 32 MiB (v6e, v7x) default scoped-VMEM limits.
            vmem_limit_bytes=VMEM_LIMIT_BYTES,
        ),
        cost_estimate=cost,
    )(x, weights)


if __name__ == "__main__":
    key = jax.random.PRNGKey(0)
    kx, kw = jax.random.split(key)

    # Deterministic stand-in for torch.nn.Parameter(torch.randn(300, 4)).
    weights = jax.random.normal(kw, (K_IN, N_OUT), dtype=jnp.float32)

    # --- small demo batch (module-consistent shape): XLA fast path ---
    batch = 8
    x = jax.random.normal(kx, (batch, K_IN), dtype=jnp.float32)
    y = single_nn_forward(x, weights)
    jax.block_until_ready(y)
    y_ref = x @ weights
    assert y.shape == (batch, N_OUT)
    assert jnp.allclose(y, y_ref, atol=1e-4, rtol=1e-4)

    # --- same small batch, forced through the Pallas kernel (single block) ---
    y_pl = single_nn_forward(x, weights, force_pallas=True)
    jax.block_until_ready(y_pl)
    assert jnp.allclose(y_pl, y_ref, atol=1e-4, rtol=1e-4)

    # --- multi-block path: non-multiple of the tile -> edge-block masking ---
    big_b = 2 * MAX_TM + 712
    xb = jax.random.normal(kx, (big_b, K_IN), dtype=jnp.float32)
    yb = single_nn_forward(xb, weights)
    jax.block_until_ready(yb)
    assert yb.shape == (big_b, N_OUT)
    assert jnp.allclose(yb, xb @ weights, atol=1e-3, rtol=1e-3)

    print("KERNEL_OK")
</pallas_src>

<mosaic_0001>
module attributes {stable_mosaic.version = 11 : i64} {
  func.func @matmul_kernel(%arg0: i32, %arg1: memref<8x300xf32, #tpu.memory_space<vmem>>, %arg2: memref<300x4xf32, #tpu.memory_space<vmem>>, %arg3: memref<8x4xf32, #tpu.memory_space<vmem>>) attributes {dimension_semantics = [#tpu.dimension_semantics<parallel>], iteration_bounds = array<i64: 1>, scalar_prefetch = 0 : i64, scratch_operands = 0 : i64, tpu.core_type = #tpu.core_type<tc>, window_params = [{transform_indices = @transform_0, window_bounds = array<i64: 8, 300>}, {pipeline_mode = #tpu.pipeline_mode<synchronous>, transform_indices = @transform_1, window_bounds = array<i64: 300, 4>}, {transform_indices = @transform_2, window_bounds = array<i64: 8, 4>}]} {
    %c0 = arith.constant 0 : index
    %c0_0 = arith.constant 0 : index
    %0 = vector.load %arg1[%c0, %c0_0] : memref<8x300xf32, #tpu.memory_space<vmem>>, vector<8x300xf32>
    %c0_1 = arith.constant 0 : index
    %c0_2 = arith.constant 0 : index
    %1 = vector.load %arg2[%c0_1, %c0_2] : memref<300x4xf32, #tpu.memory_space<vmem>>, vector<300x4xf32>
    %cst = arith.constant dense<0.000000e+00> : vector<8x4xf32>
    %2 = tpu.matmul %0, %1, %cst {dimension_numbers = #tpu.dot_dimension_numbers<[1], [0], [0], [1], [0, 0, 1, 1], [], []>} : vector<8x300xf32>, vector<300x4xf32>, vector<8x4xf32> -> vector<8x4xf32>
    %c0_3 = arith.constant 0 : index
    %c0_4 = arith.constant 0 : index
    %3 = vector.load %arg3[%c0_3, %c0_4] : memref<8x4xf32, #tpu.memory_space<vmem>>, vector<8x4xf32>
    tpu.vector_store %arg3[%c0_3, %c0_4], %2 {strides = array<i32>} : memref<8x4xf32, #tpu.memory_space<vmem>>, vector<8x4xf32>,
    return
  }
  func.func @transform_0(%arg0: i32) -> (i32, i32) {
    %c0_i32 = arith.constant 0 : i32
    %c0_i32_0 = arith.constant 0 : i32
    return %arg0, %c0_i32 : i32, i32
  }
  func.func @transform_1(%arg0: i32) -> (i32, i32) {
    %c0_i32 = arith.constant 0 : i32
    %c0_i32_0 = arith.constant 0 : i32
    %c0_i32_1 = arith.constant 0 : i32
    return %c0_i32, %c0_i32_0 : i32, i32
  }
  func.func @transform_2(%arg0: i32) -> (i32, i32) {
    %c0_i32 = arith.constant 0 : i32
    %c0_i32_0 = arith.constant 0 : i32
    return %arg0, %c0_i32 : i32, i32
  }
}

</mosaic_0001>

<bundles_post_ra>
// kernel: tpu_custom_call.1
= control target key start
LH: loop header
LB: loop body
LE: loop exit
PB: predicated region body
PF: predicated region fallthrough
CT: control target
= control target key end

     0   :  { %vm56_vm0 = vcmask 1043456   ;;  %vm52_vm1 = vcmask 359424   ;;  %vm120_vm2 = vcmask 31744   ;;  %s269_s1 = inlined_call_operand.vmem [shape: f32[300,4], index: 1, kind: input, shape index: {}]   ;;  %s270_s0 = inlined_call_operand.vmem [shape: f32[8,300], index: 0, kind: input, shape index: {}]   ;;  %s271_s2 = inlined_call_operand.vmem [shape: f32[8,4], index: 2, kind: output, shape index: {}]  }
   0x1   :  { %v29_v0 = vld [vmem:[%s269_s1 + $0x78] sm:$0xff]  ;;  %v28_v2 = vld [vmem:[%s269_s1 + $0x70] sm:$0xff]  ;;  %v27_v4 = vld [vmem:[%s269_s1 + $0x68] sm:$0xff] }
   0x2   :  { %v45_v1 = vld [vmem:[%s269_s1 + $0xf8] sm:$0xff]  ;;  %60 = vmatpush.msra.mxu0 %v29_v0  ;;  %v44_v3 = vld [vmem:[%s269_s1 + $0xf0] sm:$0xff]  ;;  %v43_v5 = vld [vmem:[%s269_s1 + $0xe8] sm:$0xff] }
   0x3   :  { %80 = vmatpush.msra.mxu1 %v45_v1  ;;  %v26_v6 = vld [vmem:[%s269_s1 + $0x60] sm:$0xff]  ;;  %v25_v8 = vld [vmem:[%s269_s1 + $0x58] sm:$0xff]  ;;  %v51_v10 = vld [vmem:[%s269_s1 + $0x128] sm:$0xf] }
   0x4   :  { %61 = vmatpush.msra.mxu0 %v28_v2  ;;  %v42_v7 = vld [vmem:[%s269_s1 + $0xe0] sm:$0xff]  ;;  %v41_v9 = vld [vmem:[%s269_s1 + $0xd8] sm:$0xff]  ;;  %v24_v12 = vld [vmem:[%s269_s1 + $0x50] sm:$0xff]  ;;  %126 = vmatpush.msk.msra.mxu2 %vm56_vm0, %v51_v10 }
   0x5   :  { %81 = vmatpush.msra.mxu1 %v44_v3  ;;  %v50_v11 = vld [vmem:[%s269_s1 + $0x120] sm:$0xff]  ;;  %v40_v13 = vld [vmem:[%s269_s1 + $0xd0] sm:$0xff]  ;;  %v49_v14 = vld [vmem:[%s269_s1 + $0x118] sm:$0xff] }
   0x6   :  { %62 = vmatpush.msra.mxu0 %v27_v4  ;;  %v23_v15 = vld [vmem:[%s269_s1 + $0x48] sm:$0xff]  ;;  %111 = vmatpush.msra.mxu2 %v50_v11  ;;  %v48_v17 = vld [vmem:[%s269_s1 + $0x110] sm:$0xff]  ;;  %v22_v18 = vld [vmem:[%s269_s1 + $0x40] sm:$0xff] }
   0x7   :  { %82 = vmatpush.msra.mxu1 %v43_v5  ;;  %v39_v16 = vld [vmem:[%s269_s1 + $0xc8] sm:$0xff]  ;;  %v38_v19 = vld [vmem:[%s269_s1 + $0xc0] sm:$0xff]  ;;  %v21_v21 = vld [vmem:[%s269_s1 + $0x38] sm:$0xff] }
   0x8   :  { %63 = vmatpush.msra.mxu0 %v26_v6  ;;  %112 = vmatpush.msra.mxu2 %v49_v14  ;;  %v47_v20 = vld [vmem:[%s269_s1 + $0x108] sm:$0xff]  ;;  %v37_v22 = vld [vmem:[%s269_s1 + $0xb8] sm:$0xff]  ;;  %v46_v23 = vld [vmem:[%s269_s1 + $0x100] sm:$0xff] }
   0x9   :  { %83 = vmatpush.msra.mxu1 %v42_v7  ;;  %v20_v24 = vld [vmem:[%s269_s1 + $0x30] sm:$0xff]  ;;  %v19_v27 = vld [vmem:[%s269_s1 + $0x28] sm:$0xff]  ;;  %v18_v29 = vld [vmem:[%s269_s1 + $0x20] sm:$0xff] }
   0xa   :  { %64 = vmatpush.msra.mxu0 %v25_v8  ;;  %113 = vmatpush.msra.mxu2 %v48_v17  ;;  %v36_v25 = vld [vmem:[%s269_s1 + $0xb0] sm:$0xff]  ;;  %v35_v28 = vld [vmem:[%s269_s1 + $0xa8] sm:$0xff]  ;;  %v34_v30 = vld [vmem:[%s269_s1 + $0xa0] sm:$0xff] }
   0xb   :  { %84 = vmatpush.msra.mxu1 %v41_v9  ;;  %v13_v26 = vld [vmem:[%s270_s0 + $0x10] sm:$0xff]  ;;  %v17_v31 = vld [vmem:[%s269_s1 + $0x18] sm:$0xff]  ;;  %v15_v35 = vld [vmem:[%s269_s1 + $0x8] sm:$0xff] }
   0xc   :  { %65 = vmatpush.msra.mxu0 %v24_v12  ;;  %114 = vmatpush.msra.mxu2 %v47_v20  ;;  %v33_v32 = vld [vmem:[%s269_s1 + $0x98] sm:$0xff]  ;;  %v16_v33 = vld [vmem:[%s269_s1 + $0x10] sm:$0xff]  ;;  %v31_v36 = vld [vmem:[%s269_s1 + $0x88] sm:$0xff] }
   0xd   :  { %85 = vmatpush.msra.mxu1 %v40_v13  ;;  %v32_v34 = vld [vmem:[%s269_s1 + $0x90] sm:$0xff]  ;;  %v14_v37 = vld [vmem:[%s269_s1] sm:$0xff]  ;;  %v12_v40 = vld [vmem:[%s270_s0 + $0x8] sm:$0xff] }
   0xe   :  { %66 = vmatpush.msra.mxu0 %v23_v15  ;;  %115 = vmatpush.msra.mxu2 %v46_v23  ;;  %v30_v38 = vld [vmem:[%s269_s1 + $0x80] sm:$0xff] }
   0xf   :  { %86 = vmatpush.msra.mxu1 %v39_v16  ;;  %127 = vmatmul.msk.f32.vlgmr.msra.gmra.mxu2 %vm52_vm1, %v13_v26  ;;  %v11_v39 = vld [vmem:[%s270_s0] sm:$0xff] }
  0x10   :  { %67 = vmatpush.msra.mxu0 %v22_v18 }
  0x11   :  { %87 = vmatpush.msra.mxu1 %v38_v19 }
  0x12   :  { %68 = vmatpush.msra.mxu0 %v21_v21 }
  0x13   :  { %88 = vmatpush.msra.mxu1 %v37_v22 }
  0x14   :  { %69 = vmatpush.msra.mxu0 %v20_v24 }
  0x15   :  { %89 = vmatpush.msra.mxu1 %v36_v25 }
  0x16   :  { %70 = vmatpush.msra.mxu0 %v19_v27 }
  0x17   :  { %90 = vmatpush.msra.mxu1 %v35_v28 }
  0x18   :  { %71 = vmatpush.msra.mxu0 %v18_v29 }
  0x19   :  { %91 = vmatpush.msra.mxu1 %v34_v30 }
  0x1a   :  { %72 = vmatpush.msra.mxu0 %v17_v31 }
  0x1b   :  { %92 = vmatpush.msra.mxu1 %v33_v32 }
  0x1c   :  { %73 = vmatpush.msra.mxu0 %v16_v33 }
  0x1d   :  { %93 = vmatpush.msra.mxu1 %v32_v34 }
  0x1e   :  { %74 = vmatpush.msra.mxu0 %v15_v35 }
  0x1f   :  { %94 = vmatpush.msra.mxu1 %v31_v36 }
  0x20   :  { %75 = vmatpush.msra.mxu0 %v14_v37 }
  0x21   :  { %95 = vmatpush.msra.mxu1 %v30_v38  ;;  %76 = vmatmul.f32.vlgmr.msra.gmra.mxu0 %v11_v39 }
  0x22   :  { %96 = vmatmul.f32.vlgmr.msra.gmra.mxu1 %v12_v40 }
  0x92   :  { %v117_v41 = vpop.f32.mrf.mxu2 }
  0x9e   :  { %v77_v42 = vpop.f32.mrf.mxu0 }
  0x9f   :  { %v97_v43 = vpop.f32.mrf.mxu1 }
  0xa0   :  { %v98_v44 = vadd.f32 %v97_v43, %v77_v42 }
  0xa2   :  { %v118_v45 = vadd.f32 %v117_v41, %v98_v44 }
  0xa4   :  { %121 = vst.msk [vmem:[%s271_s2] sm:$0xff] %vm120_vm2, %v118_v45 }

</bundles_post_ra>
